<compile_context>
chip_gen: v6e
topology: v6e:2x2x1
jax: 0.10.0
libtpu: 0.0.40
codegen_flags: <defaults>
</compile_context>

<pallas_src>
import functools

import jax
import jax.numpy as jnp
from jax import lax
from jax.experimental import pallas as pl
from jax.experimental.pallas import tpu as pltpu


def _round_up(x, m):
    return ((x + m - 1) // m) * m


def _round_down(x, m):
    return (x // m) * m


def _skipgram_kernel(emb_ref, wo_ref, o_ref, m_ref, l_ref, *,
                     tile_v, v_actual, v_padded):
    # emb_ref: (1, E)        embedding row, VMEM-resident across the grid
    # wo_ref : (TILE_V, E)   streamed W_out tile in native layout (contiguous DMA)
    # o_ref  : (1, V_pad)    VMEM-resident logits -> log-probs on last step
    # m_ref  : (1, 1)        running max           (VMEM scratch)
    # l_ref  : (1, 1)        running sum(exp)      (VMEM scratch)
    j = pl.program_id(0)

    @pl.when(j == 0)
    def _init():
        m_ref[...] = jnp.full((1, 1), -jnp.inf, dtype=jnp.float32)
        l_ref[...] = jnp.zeros((1, 1), dtype=jnp.float32)

    # (1, E) . (TILE_V, E)^T -> (1, TILE_V): contract the E dims directly so the
    # streamed weight keeps its native (V, E) layout; f32 MXU accumulation.
    s = lax.dot_general(emb_ref[...], wo_ref[...],
                        dimension_numbers=(((1,), (1,)), ((), ())),
                        preferred_element_type=jnp.float32)

    start = pl.multiple_of(j * tile_v, tile_v)
    if v_padded != v_actual:
        # Ragged V: mask columns past the real vocab out of the reduction.
        col = start + lax.broadcasted_iota(jnp.int32, (1, tile_v), 1)
        s = jnp.where(col < v_actual, s, -jnp.inf)

    # Online log-sum-exp across vocab tiles.
    m_prev = m_ref[...]
    m_new = jnp.maximum(m_prev, jnp.max(s, axis=-1, keepdims=True))
    l_ref[...] = (l_ref[...] * jnp.exp(m_prev - m_new)
                  + jnp.sum(jnp.exp(s - m_new), axis=-1, keepdims=True))
    m_ref[...] = m_new

    # Stash raw logits into the VMEM-resident output.
    o_ref[:, pl.ds(start, tile_v)] = s

    @pl.when(j == pl.num_programs(0) - 1)
    def _finalize():
        lse = m_ref[...] + jnp.log(l_ref[...])        # (1, 1)
        o_ref[...] = o_ref[...] - lse                 # broadcast over (1, V_pad)


def skipgram_forward(word_one_hot, w_mat_to_hidden, w_mat_to_out, *,
                     tile_v=None, tile_bytes=2 * 1024 * 1024,
                     stream_dtype=jnp.bfloat16):
    """SkipGram.forward: word_one_hot (V, 1) -> log-prob distribution (V, 1)."""
    V, E = w_mat_to_out.shape
    stream_dtype = jnp.dtype(stream_dtype)
    dtype_bytes = stream_dtype.itemsize

    # --- Embedding: for a strict one-hot, W_hidden @ one_hot is an exact column
    #     gather; avoids streaming the whole (E, V) W_hidden through the kernel.
    # TODO(synk): only exact for a strict one-hot input; smoothed / multi-hot
    #             inputs would need the full matvec path.
    # TODO(synk): store W_hidden as (V, E) so this is a contiguous row read
    #             instead of a strided column gather.
    idx = jnp.argmax(word_one_hot[:, 0])
    emb = jnp.take(w_mat_to_hidden, idx, axis=1).reshape(1, E).astype(stream_dtype)

    # --- Streamed weights stay in native (V, E) layout; only a dtype cast.
    # TODO(synk): store w_mat_to_out in `stream_dtype` ahead of time so this
    #             per-call cast (one extra HBM pass) disappears.
    wo = jnp.asarray(w_mat_to_out).astype(stream_dtype)

    # --- Tile the vocab axis into MiB-scale contiguous (TILE_V, E) slabs.
    if tile_v is None:
        tile_v = max(128, _round_down(tile_bytes // max(1, E * dtype_bytes), 128))
    else:
        tile_v = max(128, _round_down(int(tile_v), 128))
    # VMEM budget sized for v7x (64 MiB/TC): 2x (double-buffer) lane-padded
    # streamed tile + 8-sublane-padded resident (1, V_pad) f32 logits <~ 40 MiB.
    lane_e = _round_up(E, 128)
    out_vmem = 8 * _round_up(V, 128) * 4
    max_tile_v = _round_down(
        max(128, (40 * 1024 * 1024 - out_vmem) // (2 * lane_e * dtype_bytes)), 128)
    tile_v = min(tile_v, max_tile_v)
    if tile_v >= V:
        tile_v = V                               # single full-extent block
    num_tiles = pl.cdiv(V, tile_v)
    v_pad = num_tiles * tile_v                   # output padded to whole tiles

    vmem_budget = (2 * tile_v * lane_e * dtype_bytes        # streamed W_out tiles
                   + 8 * _round_up(v_pad, 128) * 4          # resident logits
                   + 2 * 8 * lane_e * dtype_bytes           # embedding row
                   + (2 << 20))                             # slack
    vmem_limit = int(min(96 * 1024 * 1024, max(32 * 1024 * 1024, vmem_budget)))

    kernel = functools.partial(_skipgram_kernel,
                               tile_v=tile_v, v_actual=V, v_padded=v_pad)

    out_row = pl.pallas_call(
        kernel,
        out_shape=jax.ShapeDtypeStruct((1, v_pad), jnp.float32),
        grid_spec=pltpu.PrefetchScalarGridSpec(
            num_scalar_prefetch=0,
            grid=(num_tiles,),
            in_specs=[
                pl.BlockSpec((1, E), lambda j: (0, 0)),        # embedding (resident)
                pl.BlockSpec((tile_v, E), lambda j: (j, 0)),   # native-layout W_out tile
            ],
            out_specs=pl.BlockSpec((1, v_pad), lambda j: (0, 0)),  # resident logits
            scratch_shapes=[
                pltpu.VMEM((1, 1), jnp.float32),   # running max
                pltpu.VMEM((1, 1), jnp.float32),   # running sum of exp
            ],
        ),
        compiler_params=pltpu.CompilerParams(
            dimension_semantics=("arbitrary",),    # online-LSE accumulator axis
            vmem_limit_bytes=vmem_limit,
        ),
    )(emb, wo)

    return out_row[0, :V].reshape(V, 1)


def reference_forward(word_one_hot, w_mat_to_hidden, w_mat_to_out):
    """Exact f32 reference matching the PyTorch module."""
    emb = w_mat_to_hidden @ word_one_hot          # (E, 1)
    out = w_mat_to_out @ emb                      # (V, 1)
    return jax.nn.log_softmax(out, axis=0)        # (V, 1)


def reference_forward_quantized(word_one_hot, w_mat_to_hidden, w_mat_to_out, dtype):
    """Same math but with weights/embedding quantized to `dtype` (f32 accumulate),
    mirroring the kernel's low-precision streaming path."""
    emb = (w_mat_to_hidden @ word_one_hot).astype(dtype)       # (E, 1)
    out = jnp.dot(w_mat_to_out.astype(dtype), emb,
                  preferred_element_type=jnp.float32)          # (V, 1)
    return jax.nn.log_softmax(out, axis=0)


if __name__ == "__main__":
    embed_size = 32
    vocab_size = 2048
    learn_rate = 0.01        # unused in forward

    key = jax.random.PRNGKey(0)
    k_h, k_o, k_idx = jax.random.split(key, 3)

    # Deterministic "torch.randn"-style init.
    w_mat_to_hidden = jax.random.normal(k_h, (embed_size, vocab_size), dtype=jnp.float32)
    w_mat_to_out = jax.random.normal(k_o, (vocab_size, embed_size), dtype=jnp.float32)

    # One-hot input word (V, 1).
    word_idx = int(jax.random.randint(k_idx, (), 0, vocab_size))
    word_one_hot = jnp.zeros((vocab_size, 1), dtype=jnp.float32).at[word_idx, 0].set(1.0)

    # --- Test 1: default config (bf16 streaming, auto MiB-scale tile).
    fwd = jax.jit(functools.partial(skipgram_forward))
    prob_dist = jax.block_until_ready(fwd(word_one_hot, w_mat_to_hidden, w_mat_to_out))
    ref_q = reference_forward_quantized(word_one_hot, w_mat_to_hidden, w_mat_to_out,
                                        jnp.bfloat16)
    assert prob_dist.shape == (vocab_size, 1)
    assert jnp.allclose(prob_dist, ref_q, atol=2e-3, rtol=1e-3), \
        "mismatch vs bf16 reference"

    # --- Test 2: exact f32 path, forced small tile -> multi-tile online LSE.
    out_f32 = jax.block_until_ready(
        skipgram_forward(word_one_hot, w_mat_to_hidden, w_mat_to_out,
                         tile_v=512, stream_dtype=jnp.float32))
    ref = reference_forward(word_one_hot, w_mat_to_hidden, w_mat_to_out)
    assert jnp.allclose(out_f32, ref, atol=1e-4, rtol=1e-5), "mismatch vs f32 reference"

    # --- Test 3: ragged vocab (partial last tile + lane masking), exact f32.
    V2, E2 = 900, 48
    k_h2, k_o2 = jax.random.split(jax.random.PRNGKey(1), 2)
    wh2 = jax.random.normal(k_h2, (E2, V2), dtype=jnp.float32)
    wo2 = jax.random.normal(k_o2, (V2, E2), dtype=jnp.float32)
    oh2 = jnp.zeros((V2, 1), dtype=jnp.float32).at[7, 0].set(1.0)
    out2 = jax.block_until_ready(
        skipgram_forward(oh2, wh2, wo2, tile_v=256, stream_dtype=jnp.float32))
    ref2 = reference_forward(oh2, wh2, wo2)
    assert out2.shape == (V2, 1)
    assert jnp.allclose(out2, ref2, atol=1e-4, rtol=1e-5), "mismatch vs reference (ragged)"

    print("KERNEL_OK")
</pallas_src>

<mosaic_0001>
module attributes {stable_mosaic.version = 11 : i64} {
  func.func @_skipgram_kernel(%arg0: i32, %arg1: memref<1x32xbf16, #tpu.memory_space<vmem>>, %arg2: memref<2048x32xbf16, #tpu.memory_space<vmem>>, %arg3: memref<1x2048xf32, #tpu.memory_space<vmem>>, %arg4: memref<1x1xf32, #tpu.memory_space<vmem>>, %arg5: memref<1x1xf32, #tpu.memory_space<vmem>>) attributes {dimension_semantics = [#tpu.dimension_semantics<arbitrary>], iteration_bounds = array<i64: 1>, scalar_prefetch = 0 : i64, scratch_operands = 2 : i64, tpu.core_type = #tpu.core_type<tc>, window_params = [{pipeline_mode = #tpu.pipeline_mode<synchronous>, transform_indices = @transform_0, window_bounds = array<i64: 1, 32>}, {transform_indices = @transform_1, window_bounds = array<i64: 2048, 32>}, {pipeline_mode = #tpu.pipeline_mode<synchronous>, transform_indices = @transform_2, window_bounds = array<i64: 1, 2048>}]} {
    %c0_i32 = arith.constant 0 : i32
    %0 = arith.cmpi eq, %arg0, %c0_i32 : i32
    %1 = arith.extui %0 : i1 to i32
    %c0_i32_0 = arith.constant 0 : i32
    %2 = arith.cmpi ne, %1, %c0_i32_0 : i32
    scf.if %2 {
      %cst_17 = arith.constant 0xFF800000 : f32
      %29 = vector.broadcast %cst_17 : f32 to vector<1x1xf32>
      %c0_18 = arith.constant 0 : index
      %c0_19 = arith.constant 0 : index
      %30 = vector.load %arg4[%c0_18, %c0_19] : memref<1x1xf32, #tpu.memory_space<vmem>>, vector<1x1xf32>
      tpu.vector_store %arg4[%c0_18, %c0_19], %29 {strides = array<i32>} : memref<1x1xf32, #tpu.memory_space<vmem>>, vector<1x1xf32>,
      %cst_20 = arith.constant 0.000000e+00 : f32
      %31 = vector.broadcast %cst_20 : f32 to vector<1x1xf32>
      %c0_21 = arith.constant 0 : index
      %c0_22 = arith.constant 0 : index
      %32 = vector.load %arg5[%c0_21, %c0_22] : memref<1x1xf32, #tpu.memory_space<vmem>>, vector<1x1xf32>
      tpu.vector_store %arg5[%c0_21, %c0_22], %31 {strides = array<i32>} : memref<1x1xf32, #tpu.memory_space<vmem>>, vector<1x1xf32>,
    } else {
    }
    %c0 = arith.constant 0 : index
    %c0_1 = arith.constant 0 : index
    %3 = vector.load %arg1[%c0, %c0_1] : memref<1x32xbf16, #tpu.memory_space<vmem>>, vector<1x32xbf16>
    %c0_2 = arith.constant 0 : index
    %c0_3 = arith.constant 0 : index
    %4 = vector.load %arg2[%c0_2, %c0_3] : memref<2048x32xbf16, #tpu.memory_space<vmem>>, vector<2048x32xbf16>
    %cst = arith.constant dense<0.000000e+00> : vector<1x2048xf32>
    %5 = tpu.matmul %3, %4, %cst {dimension_numbers = #tpu.dot_dimension_numbers<[1], [1], [0], [0], [0, 0, 1, 0], [], []>} : vector<1x32xbf16>, vector<2048x32xbf16>, vector<1x2048xf32> -> vector<1x2048xf32>
    %c2048_i32 = arith.constant 2048 : i32
    %6 = arith.muli %arg0, %c2048_i32 : i32
    %7 = tpu.assume_multiple %6, 2048 : i32
    %c0_4 = arith.constant 0 : index
    %c0_5 = arith.constant 0 : index
    %8 = vector.load %arg4[%c0_4, %c0_5] : memref<1x1xf32, #tpu.memory_space<vmem>>, vector<1x1xf32>
    %cst_6 = arith.constant dense<0xFF800000> : vector<1xf32>
    %9 = vector.multi_reduction <maximumf>, %5, %cst_6 [1] : vector<1x2048xf32> to vector<1xf32>
    %10 = vector.shape_cast %9 : vector<1xf32> to vector<1x1xf32>
    %11 = arith.maximumf %8, %10 : vector<1x1xf32>
    %c0_7 = arith.constant 0 : index
    %c0_8 = arith.constant 0 : index
    %12 = vector.load %arg5[%c0_7, %c0_8] : memref<1x1xf32, #tpu.memory_space<vmem>>, vector<1x1xf32>
    %13 = arith.subf %8, %11 : vector<1x1xf32>
    %14 = math.exp %13 : vector<1x1xf32>
    %15 = arith.mulf %12, %14 : vector<1x1xf32>
    %16 = vector.broadcast %11 : vector<1x1xf32> to vector<1x2048xf32>
    %17 = arith.subf %5, %16 : vector<1x2048xf32>
    %18 = math.exp %17 : vector<1x2048xf32>
    %cst_9 = arith.constant dense<0.000000e+00> : vector<1xf32>
    %19 = vector.multi_reduction <add>, %18, %cst_9 [1] : vector<1x2048xf32> to vector<1xf32>
    %20 = vector.shape_cast %19 : vector<1xf32> to vector<1x1xf32>
    %21 = arith.addf %15, %20 : vector<1x1xf32>
    %c0_10 = arith.constant 0 : index
    %c0_11 = arith.constant 0 : index
    %22 = vector.load %arg5[%c0_10, %c0_11] : memref<1x1xf32, #tpu.memory_space<vmem>>, vector<1x1xf32>
    tpu.vector_store %arg5[%c0_10, %c0_11], %21 {strides = array<i32>} : memref<1x1xf32, #tpu.memory_space<vmem>>, vector<1x1xf32>,
    %c0_12 = arith.constant 0 : index
    %c0_13 = arith.constant 0 : index
    %23 = vector.load %arg4[%c0_12, %c0_13] : memref<1x1xf32, #tpu.memory_space<vmem>>, vector<1x1xf32>
    tpu.vector_store %arg4[%c0_12, %c0_13], %11 {strides = array<i32>} : memref<1x1xf32, #tpu.memory_space<vmem>>, vector<1x1xf32>,
    %c0_14 = arith.constant 0 : index
    %24 = arith.index_cast %7 : i32 to index
    %25 = vector.load %arg3[%c0_14, %24] : memref<1x2048xf32, #tpu.memory_space<vmem>>, vector<1x2048xf32>
    tpu.vector_store %arg3[%c0_14, %24], %5 {strides = array<i32>} : memref<1x2048xf32, #tpu.memory_space<vmem>>, vector<1x2048xf32>,
    %c0_i32_15 = arith.constant 0 : i32
    %26 = arith.cmpi eq, %arg0, %c0_i32_15 : i32
    %27 = arith.extui %26 : i1 to i32
    %c0_i32_16 = arith.constant 0 : i32
    %28 = arith.cmpi ne, %27, %c0_i32_16 : i32
    scf.if %28 {
      %c0_17 = arith.constant 0 : index
      %c0_18 = arith.constant 0 : index
      %29 = vector.load %arg4[%c0_17, %c0_18] : memref<1x1xf32, #tpu.memory_space<vmem>>, vector<1x1xf32>
      %c0_19 = arith.constant 0 : index
      %c0_20 = arith.constant 0 : index
      %30 = vector.load %arg5[%c0_19, %c0_20] : memref<1x1xf32, #tpu.memory_space<vmem>>, vector<1x1xf32>
      %31 = math.log %30 : vector<1x1xf32>
      %32 = arith.addf %29, %31 : vector<1x1xf32>
      %c0_21 = arith.constant 0 : index
      %c0_22 = arith.constant 0 : index
      %33 = vector.load %arg3[%c0_21, %c0_22] : memref<1x2048xf32, #tpu.memory_space<vmem>>, vector<1x2048xf32>
      %34 = vector.broadcast %32 : vector<1x1xf32> to vector<1x2048xf32>
      %35 = arith.subf %33, %34 : vector<1x2048xf32>
      %c0_23 = arith.constant 0 : index
      %c0_24 = arith.constant 0 : index
      %36 = vector.load %arg3[%c0_23, %c0_24] : memref<1x2048xf32, #tpu.memory_space<vmem>>, vector<1x2048xf32>
      tpu.vector_store %arg3[%c0_23, %c0_24], %35 {strides = array<i32>} : memref<1x2048xf32, #tpu.memory_space<vmem>>, vector<1x2048xf32>,
    } else {
    }
    return
  }
  func.func @transform_0(%arg0: i32) -> (i32, i32) {
    %c0_i32 = arith.constant 0 : i32
    %c0_i32_0 = arith.constant 0 : i32
    %c0_i32_1 = arith.constant 0 : i32
    return %c0_i32, %c0_i32_0 : i32, i32
  }
  func.func @transform_1(%arg0: i32) -> (i32, i32) {
    %c0_i32 = arith.constant 0 : i32
    %c0_i32_0 = arith.constant 0 : i32
    return %arg0, %c0_i32 : i32, i32
  }
  func.func @transform_2(%arg0: i32) -> (i32, i32) {
    %c0_i32 = arith.constant 0 : i32
    %c0_i32_0 = arith.constant 0 : i32
    %c0_i32_1 = arith.constant 0 : i32
    return %c0_i32, %c0_i32_0 : i32, i32
  }
}

</mosaic_0001>

<bundles_post_ra>
// kernel: skipgram_forward.1
= control target key start
LH: loop header
LB: loop body
LE: loop exit
PB: predicated region body
PF: predicated region fallthrough
CT: control target
= control target key end

     0   :  { %vm917_vm0 = vcmask 261120   ;;  %s3173_s0 = inlined_call_operand.vmem [shape: bf16[1,32], index: 0, kind: input, shape index: {}]   ;;  %s3174_s1 = inlined_call_operand.vmem [shape: bf16[2048,32], index: 1, kind: input, shape index: {}]   ;;  %s3175_s2 = inlined_call_operand.hbm [shape: f32[1,2048], index: 2, kind: output, shape index: {}]  }
   0x1   :  { %v2279_v0 = vld [vmem:[%s3174_s1 + $0x78] sm:$0xff]   ;;  %v2283_v5 = vld [vmem:[%s3174_s1 + $0x70] sm:$0xff]   ;;  %v2287_v11 = vld [vmem:[%s3174_s1 + $0x68] sm:$0xff]  }
   0x2   :  { %v2280_v1 = vld [vmem:[%s3174_s1 + $0xf8] sm:$0xff]   ;;  %2208 = vmatprep.subr.msk.bf16.mxu0 %vm917_vm0, %v2279_v0  ;;  %v2284_v7 = vld [vmem:[%s3174_s1 + $0xf0] sm:$0xff]   ;;  %v2288_v13 = vld [vmem:[%s3174_s1 + $0xe8] sm:$0xff]  }
   0x3   :  { %v2281_v2 = vld [vmem:[%s3174_s1 + $0x38] sm:$0xff]   ;;  %2216 = vmatprep.subr.msk.bf16.mxu1 %vm917_vm0, %v2280_v1  ;;  %v2285_v8 = vld [vmem:[%s3174_s1 + $0x30] sm:$0xff]   ;;  %v2289_v14 = vld [vmem:[%s3174_s1 + $0x28] sm:$0xff]  }
   0x4   :  { %v2282_v3 = vld [vmem:[%s3174_s1 + $0xb8] sm:$0xff]   ;;  %v943_v4 = vsel %vm917_vm0, %v2281_v2, 0  ;;  %v2286_v9 = vld [vmem:[%s3174_s1 + $0xb0] sm:$0xff]   ;;  %v940_v10 = vsel %vm917_vm0, %v2285_v8, 0  ;;  %v2290_v15 = vld [vmem:[%s3174_s1 + $0xa8] sm:$0xff]   ;;  %v937_v16 = vsel %vm917_vm0, %v2289_v14, 0 }
   0x5   :  { %2065 = vmatpush3.bf16.xpose.msra.mxu0 %v943_v4  ;;  %v991_v6 = vsel %vm917_vm0, %v2282_v3, 0  ;;  %v988_v12 = vsel %vm917_vm0, %v2286_v9, 0  ;;  %v2291_v17 = vld [vmem:[%s3174_s1 + $0x60] sm:$0xff]   ;;  %v985_v18 = vsel %vm917_vm0, %v2290_v15, 0  ;;  %v2295_v23 = vld [vmem:[%s3174_s1 + $0x58] sm:$0xff]   ;;  %v2299_v30 = vld [vmem:[%s3174_s1 + $0x50] sm:$0xff]  }
   0x6   :  { %2083 = vmatpush3.bf16.xpose.msra.mxu1 %v991_v6  ;;  %2209 = vmatprep.subr.msk.bf16.mxu0 %vm917_vm0, %v2283_v5  ;;  %v2292_v19 = vld [vmem:[%s3174_s1 + $0xe0] sm:$0xff]   ;;  %v2296_v25 = vld [vmem:[%s3174_s1 + $0xd8] sm:$0xff]   ;;  %v2300_v32 = vld [vmem:[%s3174_s1 + $0xd0] sm:$0xff]  }
   0x7   :  { %2217 = vmatprep.subr.msk.bf16.mxu1 %vm917_vm0, %v2284_v7  ;;  %v2293_v20 = vld [vmem:[%s3174_s1 + $0x20] sm:$0xff]   ;;  %v2297_v26 = vld [vmem:[%s3174_s1 + $0x18] sm:$0xff]   ;;  %v2301_v33 = vld [vmem:[%s3174_s1 + $0x10] sm:$0xff]  }
   0x8   :  { %v2294_v21 = vld [vmem:[%s3174_s1 + $0xa0] sm:$0xff]   ;;  %v934_v22 = vsel %vm917_vm0, %v2293_v20, 0  ;;  %v2298_v27 = vld [vmem:[%s3174_s1 + $0x98] sm:$0xff]   ;;  %v931_v29 = vsel %vm917_vm0, %v2297_v26, 0  ;;  %v2302_v34 = vld [vmem:[%s3174_s1 + $0x90] sm:$0xff]   ;;  %v928_v35 = vsel %vm917_vm0, %v2301_v33, 0 }
   0x9   :  { %v982_v24 = vsel %vm917_vm0, %v2294_v21, 0  ;;  %v2566_v28 = vld [vmem:[%s3173_s0] sm:$0x1]  ;;  %v979_v31 = vsel %vm917_vm0, %v2298_v27, 0  ;;  %v2303_v36 = vld [vmem:[%s3174_s1 + $0x48] sm:$0xff]   ;;  %v976_v37 = vsel %vm917_vm0, %v2302_v34, 0 }
   0xa   :  { %2080 = vmatprep.mubr.msk.bf16.mxu0 %vm917_vm0, %v2566_v28  ;;  %2098 = vmatprep.mubr.msk.bf16.mxu1 %vm917_vm0, %v2566_v28  ;;  %v2304_v38 = vld [vmem:[%s3174_s1 + $0xc8] sm:$0xff]   ;;  %v2307_v42 = vld [vmem:[%s3174_s1 + $0x40] sm:$0xff]   ;;  %v2311_v48 = vld [vmem:[%s3174_s1 + $0x178] sm:$0xff]  }
   0xb   :  { %v2305_v39 = vld [vmem:[%s3174_s1 + $0x8] sm:$0xff]   ;;  %v2308_v44 = vld [vmem:[%s3174_s1 + $0xc0] sm:$0xff]   ;;  %v2312_v50 = vld [vmem:[%s3174_s1 + $0x1f8] sm:$0xff]  }
   0xc   :  { %v2306_v40 = vld [vmem:[%s3174_s1 + $0x88] sm:$0xff]   ;;  %v925_v41 = vsel %vm917_vm0, %v2305_v39, 0  ;;  %v2309_v45 = vld [vmem:[%s3174_s1] sm:$0xff]   ;;  %v2313_v51 = vld [vmem:[%s3174_s1 + $0x138] sm:$0xff]  }
   0xd   :  { %2067 = vmatpush3.bf16.xpose.msra.mxu0 %v940_v10  ;;  %v973_v43 = vsel %vm917_vm0, %v2306_v40, 0  ;;  %v2310_v46 = vld [vmem:[%s3174_s1 + $0x80] sm:$0xff]   ;;  %v922_v47 = vsel %vm917_vm0, %v2309_v45, 0  ;;  %v2314_v52 = vld [vmem:[%s3174_s1 + $0x1b8] sm:$0xff]   ;;  %v1039_v53 = vsel %vm917_vm0, %v2313_v51, 0  ;;  %v2315_v54 = vld [vmem:[%s3174_s1 + $0x170] sm:$0xff]  }
   0xe   :  { %2085 = vmatpush3.bf16.xpose.msra.mxu1 %v988_v12  ;;  %2210 = vmatprep.subr.msk.bf16.mxu0 %vm917_vm0, %v2287_v11  ;;  %v970_v49 = vsel %vm917_vm0, %v2310_v46, 0  ;;  %v1087_v55 = vsel %vm917_vm0, %v2314_v52, 0  ;;  %v2316_v56 = vld [vmem:[%s3174_s1 + $0x1f0] sm:$0xff]   ;;  %v2319_v60 = vld [vmem:[%s3174_s1 + $0x168] sm:$0xff]   ;;  %v2323_v2 = vld [vmem:[%s3174_s1 + $0x160] sm:$0xff]  }
   0xf   :  { %2218 = vmatprep.subr.msk.bf16.mxu1 %vm917_vm0, %v2288_v13  ;;  %v2317_v57 = vld [vmem:[%s3174_s1 + $0x130] sm:$0xff]   ;;  %v2320_v62 = vld [vmem:[%s3174_s1 + $0x1e8] sm:$0xff]   ;;  %v2324_v4 = vld [vmem:[%s3174_s1 + $0x1e0] sm:$0xff]  }
  0x10   :  { %v2318_v58 = vld [vmem:[%s3174_s1 + $0x1b0] sm:$0xff]   ;;  %v1036_v59 = vsel %vm917_vm0, %v2317_v57, 0  ;;  %v2321_v63 = vld [vmem:[%s3174_s1 + $0x128] sm:$0xff]   ;;  %v2325_v5 = vld [vmem:[%s3174_s1 + $0x120] sm:$0xff]  }
  0x11   :  { %v1084_v61 = vsel %vm917_vm0, %v2318_v58, 0  ;;  %v2322_v0 = vld [vmem:[%s3174_s1 + $0x1a8] sm:$0xff]   ;;  %v1033_v1 = vsel %vm917_vm0, %v2321_v63, 0  ;;  %v2326_v6 = vld [vmem:[%s3174_s1 + $0x1a0] sm:$0xff]   ;;  %v1030_v7 = vsel %vm917_vm0, %v2325_v5, 0  ;;  %v2327_v8 = vld [vmem:[%s3174_s1 + $0x158] sm:$0xff]  }
  0x12   :  { %v1081_v3 = vsel %vm917_vm0, %v2322_v0, 0  ;;  %v1078_v9 = vsel %vm917_vm0, %v2326_v6, 0  ;;  %v2328_v10 = vld [vmem:[%s3174_s1 + $0x1d8] sm:$0xff]   ;;  %v2331_v14 = vld [vmem:[%s3174_s1 + $0x150] sm:$0xff]   ;;  %v2335_v20 = vld [vmem:[%s3174_s1 + $0x148] sm:$0xff]  }
  0x13   :  { %v2329_v11 = vld [vmem:[%s3174_s1 + $0x118] sm:$0xff]   ;;  %v2339_v26 = vld [vmem:[%s3174_s1 + $0x140] sm:$0xff]  }
  0x14   :  { %v2330_v12 = vld [vmem:[%s3174_s1 + $0x198] sm:$0xff]   ;;  %v1027_v13 = vsel %vm917_vm0, %v2329_v11, 0 }
  0x15   :  { %2069 = vmatpush3.bf16.xpose.msra.mxu0 %v937_v16  ;;  %v1075_v15 = vsel %vm917_vm0, %v2330_v12, 0  ;;  %v2332_v16 = vld [vmem:[%s3174_s1 + $0x1d0] sm:$0xff]   ;;  %v2343_v33 = vld [vmem:[%s3174_s1 + $0x278] sm:$0xff]  }
  0x16   :  { %2087 = vmatpush3.bf16.xpose.msra.mxu1 %v985_v18  ;;  %2211 = vmatprep.subr.msk.bf16.mxu0 %vm917_vm0, %v2291_v17  ;;  %v2333_v17 = vld [vmem:[%s3174_s1 + $0x110] sm:$0xff]  }
  0x17   :  { %2219 = vmatprep.subr.msk.bf16.mxu1 %vm917_vm0, %v2292_v19  ;;  %v2334_v18 = vld [vmem:[%s3174_s1 + $0x190] sm:$0xff]   ;;  %v1024_v19 = vsel %vm917_vm0, %v2333_v17, 0 }
  0x18   :  { %v1072_v21 = vsel %vm917_vm0, %v2334_v18, 0 }
  0x1d   :  { %2071 = vmatpush3.bf16.xpose.msra.mxu0 %v934_v22  ;;  %v2336_v22 = vld [vmem:[%s3174_s1 + $0x1c8] sm:$0xff]  }
  0x1e   :  { %2089 = vmatpush3.bf16.xpose.msra.mxu1 %v982_v24  ;;  %2212 = vmatprep.subr.msk.bf16.mxu0 %vm917_vm0, %v2295_v23  ;;  %v2337_v23 = vld [vmem:[%s3174_s1 + $0x108] sm:$0xff]  }
  0x1f   :  { %2220 = vmatprep.subr.msk.bf16.mxu1 %vm917_vm0, %v2296_v25  ;;  %v2338_v24 = vld [vmem:[%s3174_s1 + $0x188] sm:$0xff]   ;;  %v1021_v25 = vsel %vm917_vm0, %v2337_v23, 0 }
  0x20   :  { %v1069_v27 = vsel %vm917_vm0, %v2338_v24, 0 }
  0x25   :  { %2073 = vmatpush3.bf16.xpose.msra.mxu0 %v931_v29  ;;  %v2340_v29 = vld [vmem:[%s3174_s1 + $0x1c0] sm:$0xff]  }
  0x26   :  { %2091 = vmatpush3.bf16.xpose.msra.mxu1 %v979_v31  ;;  %2213 = vmatprep.subr.msk.bf16.mxu0 %vm917_vm0, %v2299_v30  ;;  %v2341_v30 = vld [vmem:[%s3174_s1 + $0x100] sm:$0xff]  }
  0x27   :  { %2221 = vmatprep.subr.msk.bf16.mxu1 %vm917_vm0, %v2300_v32  ;;  %v2342_v31 = vld [vmem:[%s3174_s1 + $0x180] sm:$0xff]   ;;  %v1018_v32 = vsel %vm917_vm0, %v2341_v30, 0 }
  0x28   :  { %v1066_v34 = vsel %vm917_vm0, %v2342_v31, 0 }
  0x2d   :  { %2075 = vmatpush3.bf16.xpose.msra.mxu0 %v928_v35  ;;  %v2344_v35 = vld [vmem:[%s3174_s1 + $0x2f8] sm:$0xff]  }
  0x2e   :  { %2093 = vmatpush3.bf16.xpose.msra.mxu1 %v976_v37  ;;  %2214 = vmatprep.subr.msk.bf16.mxu0 %vm917_vm0, %v2303_v36  ;;  %v2345_v36 = vld [vmem:[%s3174_s1 + $0x238] sm:$0xff]  }
  0x2f   :  { %2222 = vmatprep.subr.msk.bf16.mxu1 %vm917_vm0, %v2304_v38  ;;  %v2346_v37 = vld [vmem:[%s3174_s1 + $0x2b8] sm:$0xff]  }
  0x35   :  { %2077 = vmatpush3.bf16.xpose.msra.mxu0 %v925_v41 }
  0x36   :  { %2095 = vmatpush3.bf16.xpose.msra.mxu1 %v973_v43  ;;  %2215 = vmatprep.subr.msk.bf16.mxu0 %vm917_vm0, %v2307_v42 }
  0x37   :  { %2223 = vmatprep.subr.msk.bf16.mxu1 %vm917_vm0, %v2308_v44 }
  0x3d   :  { %2079 = vmatpush3.bf16.xpose.msra.mxu0 %v922_v47 }
  0x3e   :  { %2097 = vmatpush3.bf16.xpose.msra.mxu1 %v970_v49  ;;  %2224 = vmatprep.subr.msk.bf16.mxu0 %vm917_vm0, %v2311_v48 }
  0x3f   :  { %2232 = vmatprep.subr.msk.bf16.mxu1 %vm917_vm0, %v2312_v50 }
  0x44   :  { %2081 = vmatmul.mubr.msk.bf16.vlgmr.msra.gmra.mxu0 %vm917_vm0, %v2566_v28 }
  0x45   :  { %2099 = vmatmul.mubr.msk.bf16.vlgmr.msra.gmra.mxu1 %vm917_vm0, %v2566_v28  ;;  %2101 = vmatpush3.bf16.xpose.msra.mxu0 %v1039_v53 }
  0x46   :  { %2119 = vmatpush3.bf16.xpose.msra.mxu1 %v1087_v55  ;;  %2225 = vmatprep.subr.msk.bf16.mxu0 %vm917_vm0, %v2315_v54 }
  0x47   :  { %2233 = vmatprep.subr.msk.bf16.mxu1 %vm917_vm0, %v2316_v56  ;;  %2116 = vmatprep.mubr.msk.bf16.mxu0 %vm917_vm0, %v2566_v28 }
  0x48   :  { %2134 = vmatprep.mubr.msk.bf16.mxu1 %vm917_vm0, %v2566_v28 }
  0x4d   :  { %2103 = vmatpush3.bf16.xpose.msra.mxu0 %v1036_v59 }
  0x4e   :  { %2121 = vmatpush3.bf16.xpose.msra.mxu1 %v1084_v61  ;;  %2226 = vmatprep.subr.msk.bf16.mxu0 %vm917_vm0, %v2319_v60 }
  0x4f   :  { %2234 = vmatprep.subr.msk.bf16.mxu1 %vm917_vm0, %v2320_v62 }
  0x55   :  { %2105 = vmatpush3.bf16.xpose.msra.mxu0 %v1033_v1 }
  0x56   :  { %2123 = vmatpush3.bf16.xpose.msra.mxu1 %v1081_v3  ;;  %2227 = vmatprep.subr.msk.bf16.mxu0 %vm917_vm0, %v2323_v2 }
  0x57   :  { %2235 = vmatprep.subr.msk.bf16.mxu1 %vm917_vm0, %v2324_v4 }
  0x5d   :  { %2107 = vmatpush3.bf16.xpose.msra.mxu0 %v1030_v7 }
  0x5e   :  { %2125 = vmatpush3.bf16.xpose.msra.mxu1 %v1078_v9  ;;  %2228 = vmatprep.subr.msk.bf16.mxu0 %vm917_vm0, %v2327_v8 }
  0x5f   :  { %2236 = vmatprep.subr.msk.bf16.mxu1 %vm917_vm0, %v2328_v10 }
  0x65   :  { %2109 = vmatpush3.bf16.xpose.msra.mxu0 %v1027_v13 }
  0x66   :  { %2127 = vmatpush3.bf16.xpose.msra.mxu1 %v1075_v15  ;;  %2229 = vmatprep.subr.msk.bf16.mxu0 %vm917_vm0, %v2331_v14 }
  0x67   :  { %2237 = vmatprep.subr.msk.bf16.mxu1 %vm917_vm0, %v2332_v16 }
  0x6d   :  { %2111 = vmatpush3.bf16.xpose.msra.mxu0 %v1024_v19 }
  0x6e   :  { %2129 = vmatpush3.bf16.xpose.msra.mxu1 %v1072_v21  ;;  %2230 = vmatprep.subr.msk.bf16.mxu0 %vm917_vm0, %v2335_v20 }
  0x6f   :  { %2238 = vmatprep.subr.msk.bf16.mxu1 %vm917_vm0, %v2336_v22 }
  0x75   :  { %2113 = vmatpush3.bf16.xpose.msra.mxu0 %v1021_v25 }
  0x76   :  { %2131 = vmatpush3.bf16.xpose.msra.mxu1 %v1069_v27  ;;  %2231 = vmatprep.subr.msk.bf16.mxu0 %vm917_vm0, %v2339_v26 }
  0x77   :  { %2239 = vmatprep.subr.msk.bf16.mxu1 %vm917_vm0, %v2340_v29 }
  0x7d   :  { %2115 = vmatpush3.bf16.xpose.msra.mxu0 %v1018_v32 }
  0x7e   :  { %2133 = vmatpush3.bf16.xpose.msra.mxu1 %v1066_v34  ;;  %2240 = vmatprep.subr.msk.bf16.mxu0 %vm917_vm0, %v2343_v33 }
  0x7f   :  { %2248 = vmatprep.subr.msk.bf16.mxu1 %vm917_vm0, %v2344_v35 }
  0x80   :  { %7 = vsyncpa [#allocation5], 0  ;;  %v1135_v38 = vsel %vm917_vm0, %v2345_v36, 0  ;;  %v2347_v39 = vld [vmem:[%s3174_s1 + $0x270] sm:$0xff]   ;;  %v1183_v40 = vsel %vm917_vm0, %v2346_v37, 0  ;;  %v2351_v45 = vld [vmem:[%s3174_s1 + $0x268] sm:$0xff]  }
  0x81   :  { %v2348_v41 = vld [vmem:[%s3174_s1 + $0x2f0] sm:$0xff]   ;;  %v2352_v47 = vld [vmem:[%s3174_s1 + $0x2e8] sm:$0xff]   ;;  %v2355_v51 = vld [vmem:[%s3174_s1 + $0x260] sm:$0xff]   ;;  %vm1635_vm1 = vcmask 1040384   ;;  %vm17_vm2 = vcmask 0  }
  0x82   :  { %v2349_v42 = vld [vmem:[%s3174_s1 + $0x230] sm:$0xff]   ;;  %v2353_v48 = vld [vmem:[%s3174_s1 + $0x228] sm:$0xff]   ;;  %v2356_v53 = vld [vmem:[%s3174_s1 + $0x2e0] sm:$0xff]  }
  0x83   :  { %v2350_v43 = vld [vmem:[%s3174_s1 + $0x2b0] sm:$0xff]   ;;  %v1132_v44 = vsel %vm917_vm0, %v2349_v42, 0  ;;  %v2354_v49 = vld [vmem:[%s3174_s1 + $0x2a8] sm:$0xff]   ;;  %v1129_v50 = vsel %vm917_vm0, %v2353_v48, 0  ;;  %v2357_v54 = vld [vmem:[%s3174_s1 + $0x220] sm:$0xff]  }
  0x84   :  { %2117 = vmatmul.mubr.msk.bf16.vlgmr.msra.gmra.mxu0 %vm917_vm0, %v2566_v28  ;;  %v1180_v46 = vsel %vm917_vm0, %v2350_v43, 0  ;;  %v1177_v52 = vsel %vm917_vm0, %v2354_v49, 0  ;;  %v2358_v55 = vld [vmem:[%s3174_s1 + $0x2a0] sm:$0xff]   ;;  %v1126_v56 = vsel %vm917_vm0, %v2357_v54, 0  ;;  %v2359_v57 = vld [vmem:[%s3174_s1 + $0x258] sm:$0xff]   ;;  %v2363_v63 = vld [vmem:[%s3174_s1 + $0x250] sm:$0xff]  }
  0x85   :  { %2135 = vmatmul.mubr.msk.bf16.vlgmr.msra.gmra.mxu1 %vm917_vm0, %v2566_v28  ;;  %2137 = vmatpush3.bf16.xpose.msra.mxu0 %v1135_v38  ;;  %v1174_v58 = vsel %vm917_vm0, %v2358_v55, 0  ;;  %v2360_v59 = vld [vmem:[%s3174_s1 + $0x2d8] sm:$0xff]   ;;  %v2364_v1 = vld [vmem:[%s3174_s1 + $0x2d0] sm:$0xff]   ;;  %v2367_v5 = vld [vmem:[%s3174_s1 + $0x248] sm:$0xff]  }
  0x86   :  { %2155 = vmatpush3.bf16.xpose.msra.mxu1 %v1183_v40  ;;  %2241 = vmatprep.subr.msk.bf16.mxu0 %vm917_vm0, %v2347_v39  ;;  %v2361_v60 = vld [vmem:[%s3174_s1 + $0x218] sm:$0xff]   ;;  %v2365_v2 = vld [vmem:[%s3174_s1 + $0x210] sm:$0xff]   ;;  %v2368_v7 = vld [vmem:[%s3174_s1 + $0x2c8] sm:$0xff]  }
  0x87   :  { %2249 = vmatprep.subr.msk.bf16.mxu1 %vm917_vm0, %v2348_v41  ;;  %2152 = vmatprep.mubr.msk.bf16.mxu0 %vm917_vm0, %v2566_v28  ;;  %v2362_v61 = vld [vmem:[%s3174_s1 + $0x298] sm:$0xff]   ;;  %v1123_v62 = vsel %vm917_vm0, %v2361_v60, 0  ;;  %v2366_v3 = vld [vmem:[%s3174_s1 + $0x290] sm:$0xff]   ;;  %v1120_v4 = vsel %vm917_vm0, %v2365_v2, 0  ;;  %v2369_v8 = vld [vmem:[%s3174_s1 + $0x208] sm:$0xff]  }
  0x88   :  { %2170 = vmatprep.mubr.msk.bf16.mxu1 %vm917_vm0, %v2566_v28  ;;  %v1171_v0 = vsel %vm917_vm0, %v2362_v61, 0  ;;  %v1168_v6 = vsel %vm917_vm0, %v2366_v3, 0  ;;  %v2370_v9 = vld [vmem:[%s3174_s1 + $0x288] sm:$0xff]   ;;  %v1117_v10 = vsel %vm917_vm0, %v2369_v8, 0  ;;  %v2371_v11 = vld [vmem:[%s3174_s1 + $0x240] sm:$0xff]   ;;  %v2375_v17 = vld [vmem:[%s3174_s1 + $0x378] sm:$0xff]  }
  0x89   :  { %v1165_v12 = vsel %vm917_vm0, %v2370_v9, 0  ;;  %v2372_v13 = vld [vmem:[%s3174_s1 + $0x2c0] sm:$0xff]   ;;  %v2376_v19 = vld [vmem:[%s3174_s1 + $0x3f8] sm:$0xff]   ;;  %v2379_v23 = vld [vmem:[%s3174_s1 + $0x370] sm:$0xff]  }
  0x8a   :  { %v2373_v14 = vld [vmem:[%s3174_s1 + $0x200] sm:$0xff]   ;;  %v2377_v20 = vld [vmem:[%s3174_s1 + $0x338] sm:$0xff]   ;;  %v2380_v25 = vld [vmem:[%s3174_s1 + $0x3f0] sm:$0xff]  }
  0x8b   :  { %v2374_v15 = vld [vmem:[%s3174_s1 + $0x280] sm:$0xff]   ;;  %v1114_v16 = vsel %vm917_vm0, %v2373_v14, 0  ;;  %v2378_v21 = vld [vmem:[%s3174_s1 + $0x3b8] sm:$0xff]   ;;  %v1231_v22 = vsel %vm917_vm0, %v2377_v20, 0  ;;  %v2381_v26 = vld [vmem:[%s3174_s1 + $0x330] sm:$0xff]  }
  0x8c   :  { %v1162_v18 = vsel %vm917_vm0, %v2374_v15, 0  ;;  %v1279_v24 = vsel %vm917_vm0, %v2378_v21, 0  ;;  %v2382_v27 = vld [vmem:[%s3174_s1 + $0x3b0] sm:$0xff]   ;;  %v1228_v29 = vsel %vm917_vm0, %v2381_v26, 0  ;;  %v2383_v30 = vld [vmem:[%s3174_s1 + $0x368] sm:$0xff]   ;;  %v2387_v36 = vld [vmem:[%s3174_s1 + $0x360] sm:$0xff]  }
  0x8d   :  { %2139 = vmatpush3.bf16.xpose.msra.mxu0 %v1132_v44  ;;  %v1276_v31 = vsel %vm917_vm0, %v2382_v27, 0  ;;  %v2384_v32 = vld [vmem:[%s3174_s1 + $0x3e8] sm:$0xff]   ;;  %v2388_v38 = vld [vmem:[%s3174_s1 + $0x3e0] sm:$0xff]   ;;  %v2391_v42 = vld [vmem:[%s3174_s1 + $0x358] sm:$0xff]  }
  0x8e   :  { %2157 = vmatpush3.bf16.xpose.msra.mxu1 %v1180_v46  ;;  %2242 = vmatprep.subr.msk.bf16.mxu0 %vm917_vm0, %v2351_v45  ;;  %v2385_v33 = vld [vmem:[%s3174_s1 + $0x328] sm:$0xff]   ;;  %v2389_v39 = vld [vmem:[%s3174_s1 + $0x320] sm:$0xff]   ;;  %v2392_v44 = vld [vmem:[%s3174_s1 + $0x3d8] sm:$0xff]  }
  0x8f   :  { %2250 = vmatprep.subr.msk.bf16.mxu1 %vm917_vm0, %v2352_v47  ;;  %v2386_v34 = vld [vmem:[%s3174_s1 + $0x3a8] sm:$0xff]   ;;  %v1225_v35 = vsel %vm917_vm0, %v2385_v33, 0  ;;  %v2390_v40 = vld [vmem:[%s3174_s1 + $0x3a0] sm:$0xff]   ;;  %v1222_v41 = vsel %vm917_vm0, %v2389_v39, 0  ;;  %v2393_v45 = vld [vmem:[%s3174_s1 + $0x318] sm:$0xff]  }
  0x90   :  { %v1273_v37 = vsel %vm917_vm0, %v2386_v34, 0  ;;  %v1270_v43 = vsel %vm917_vm0, %v2390_v40, 0  ;;  %v2394_v46 = vld [vmem:[%s3174_s1 + $0x398] sm:$0xff]   ;;  %v1219_v47 = vsel %vm917_vm0, %v2393_v45, 0  ;;  %v2395_v48 = vld [vmem:[%s3174_s1 + $0x350] sm:$0xff]   ;;  %v2399_v54 = vld [vmem:[%s3174_s1 + $0x348] sm:$0xff]  }
  0x91   :  { %v1267_v49 = vsel %vm917_vm0, %v2394_v46, 0  ;;  %v2403_v60 = vld [vmem:[%s3174_s1 + $0x340] sm:$0xff]  }
  0x95   :  { %2141 = vmatpush3.bf16.xpose.msra.mxu0 %v1129_v50  ;;  %v2396_v50 = vld [vmem:[%s3174_s1 + $0x3d0] sm:$0xff]  }
  0x96   :  { %2159 = vmatpush3.bf16.xpose.msra.mxu1 %v1177_v52  ;;  %2243 = vmatprep.subr.msk.bf16.mxu0 %vm917_vm0, %v2355_v51  ;;  %v2397_v51 = vld [vmem:[%s3174_s1 + $0x310] sm:$0xff]  }
  0x97   :  { %2251 = vmatprep.subr.msk.bf16.mxu1 %vm917_vm0, %v2356_v53  ;;  %v2398_v52 = vld [vmem:[%s3174_s1 + $0x390] sm:$0xff]   ;;  %v1216_v53 = vsel %vm917_vm0, %v2397_v51, 0 }
  0x98   :  { %v1264_v55 = vsel %vm917_vm0, %v2398_v52, 0 }
  0x9d   :  { %2143 = vmatpush3.bf16.xpose.msra.mxu0 %v1126_v56  ;;  %v2400_v56 = vld [vmem:[%s3174_s1 + $0x3c8] sm:$0xff]  }
  0x9e   :  { %2161 = vmatpush3.bf16.xpose.msra.mxu1 %v1174_v58  ;;  %2244 = vmatprep.subr.msk.bf16.mxu0 %vm917_vm0, %v2359_v57  ;;  %v2401_v57 = vld [vmem:[%s3174_s1 + $0x308] sm:$0xff]  }
  0x9f   :  { %2252 = vmatprep.subr.msk.bf16.mxu1 %vm917_vm0, %v2360_v59  ;;  %v2402_v58 = vld [vmem:[%s3174_s1 + $0x388] sm:$0xff]   ;;  %v1213_v59 = vsel %vm917_vm0, %v2401_v57, 0 }
  0xa0   :  { %v1261_v61 = vsel %vm917_vm0, %v2402_v58, 0 }
  0xa5   :  { %2145 = vmatpush3.bf16.xpose.msra.mxu0 %v1123_v62  ;;  %v2404_v62 = vld [vmem:[%s3174_s1 + $0x3c0] sm:$0xff]  }
  0xa6   :  { %2163 = vmatpush3.bf16.xpose.msra.mxu1 %v1171_v0  ;;  %2245 = vmatprep.subr.msk.bf16.mxu0 %vm917_vm0, %v2363_v63  ;;  %v2405_v63 = vld [vmem:[%s3174_s1 + $0x300] sm:$0xff]  }
  0xa7   :  { %2253 = vmatprep.subr.msk.bf16.mxu1 %vm917_vm0, %v2364_v1  ;;  %v2406_v0 = vld [vmem:[%s3174_s1 + $0x380] sm:$0xff]   ;;  %v1210_v1 = vsel %vm917_vm0, %v2405_v63, 0  ;;  %s2469_s1 = smov [#allocation4]  }
  0xa8   :  { %v1258_v2 = vsel %vm917_vm0, %v2406_v0, 0  ;;  %s1919_s7 = sshll.u32 %s2469_s1, 4  ;;  %s1920_s7 = int_to_ptr.vmem [resolvable:$true] %s1919_s7 }
  0xa9   :  { %s2443_s8 = scalar_lea.vmem %s1920_s7, 256  ;;  %p2448_p1 = scmp.lt.s32.totalorder %s1920_s7, %s1920_s7 }
  0xaa   :  { %p2444_p0 = scmp.ne.s32.totalorder %s1920_s7, %s2443_s8  ;;  %p2449_p2 = scmp.lt.s32.totalorder %s2443_s8, %s2443_s8 }
  0xac   :  { %p2450_p3 = por %p2449_p2, %p2448_p1 }
  0xad   :  { %2147 = vmatpush3.bf16.xpose.msra.mxu0 %v1120_v4 }
  0xae   :  { %2165 = vmatpush3.bf16.xpose.msra.mxu1 %v1168_v6  ;;  %2246 = vmatprep.subr.msk.bf16.mxu0 %vm917_vm0, %v2367_v5  ;;  %p2451_p4 = pnand %p2450_p3, %p2444_p0 }
  0xaf   :  { %2254 = vmatprep.subr.msk.bf16.mxu1 %vm917_vm0, %v2368_v7 }
  0xb5   :  { %2149 = vmatpush3.bf16.xpose.msra.mxu0 %v1117_v10 }
  0xb6   :  { %2167 = vmatpush3.bf16.xpose.msra.mxu1 %v1165_v12  ;;  %2247 = vmatprep.subr.msk.bf16.mxu0 %vm917_vm0, %v2371_v11 }
  0xb7   :  { %2255 = vmatprep.subr.msk.bf16.mxu1 %vm917_vm0, %v2372_v13 }
  0xbd   :  { %2151 = vmatpush3.bf16.xpose.msra.mxu0 %v1114_v16 }
  0xbe   :  { %2169 = vmatpush3.bf16.xpose.msra.mxu1 %v1162_v18  ;;  %2256 = vmatprep.subr.msk.bf16.mxu0 %vm917_vm0, %v2375_v17 }
  0xbf   :  { %2264 = vmatprep.subr.msk.bf16.mxu1 %vm917_vm0, %v2376_v19 }
  0xc4   :  { %2153 = vmatmul.mubr.msk.bf16.vlgmr.msra.gmra.mxu0 %vm917_vm0, %v2566_v28 }
  0xc5   :  { %2171 = vmatmul.mubr.msk.bf16.vlgmr.msra.gmra.mxu1 %vm917_vm0, %v2566_v28  ;;  %2173 = vmatpush3.bf16.xpose.msra.mxu0 %v1231_v22 }
  0xc6   :  { %2191 = vmatpush3.bf16.xpose.msra.mxu1 %v1279_v24  ;;  %2257 = vmatprep.subr.msk.bf16.mxu0 %vm917_vm0, %v2379_v23 }
  0xc7   :  { %2265 = vmatprep.subr.msk.bf16.mxu1 %vm917_vm0, %v2380_v25  ;;  %2188 = vmatprep.mubr.msk.bf16.mxu0 %vm917_vm0, %v2566_v28 }
  0xc8   :  { %2206 = vmatprep.mubr.msk.bf16.mxu1 %vm917_vm0, %v2566_v28 }
  0xcd   :  { %2175 = vmatpush3.bf16.xpose.msra.mxu0 %v1228_v29 }
  0xce   :  { %2193 = vmatpush3.bf16.xpose.msra.mxu1 %v1276_v31  ;;  %2258 = vmatprep.subr.msk.bf16.mxu0 %vm917_vm0, %v2383_v30 }
  0xcf   :  { %2266 = vmatprep.subr.msk.bf16.mxu1 %vm917_vm0, %v2384_v32 }
  0xd5   :  { %2177 = vmatpush3.bf16.xpose.msra.mxu0 %v1225_v35 }
  0xd6   :  { %2195 = vmatpush3.bf16.xpose.msra.mxu1 %v1273_v37  ;;  %2259 = vmatprep.subr.msk.bf16.mxu0 %vm917_vm0, %v2387_v36 }
  0xd7   :  { %2267 = vmatprep.subr.msk.bf16.mxu1 %vm917_vm0, %v2388_v38 }
  0xdd   :  { %2179 = vmatpush3.bf16.xpose.msra.mxu0 %v1222_v41 }
  0xde   :  { %2197 = vmatpush3.bf16.xpose.msra.mxu1 %v1270_v43  ;;  %2260 = vmatprep.subr.msk.bf16.mxu0 %vm917_vm0, %v2391_v42 }
  0xdf   :  { %2268 = vmatprep.subr.msk.bf16.mxu1 %vm917_vm0, %v2392_v44 }
  0xe5   :  { %2181 = vmatpush3.bf16.xpose.msra.mxu0 %v1219_v47 }
  0xe6   :  { %2199 = vmatpush3.bf16.xpose.msra.mxu1 %v1267_v49  ;;  %2261 = vmatprep.subr.msk.bf16.mxu0 %vm917_vm0, %v2395_v48 }
  0xe7   :  { %2269 = vmatprep.subr.msk.bf16.mxu1 %vm917_vm0, %v2396_v50 }
  0xed   :  { %2183 = vmatpush3.bf16.xpose.msra.mxu0 %v1216_v53 }
  0xee   :  { %2201 = vmatpush3.bf16.xpose.msra.mxu1 %v1264_v55  ;;  %2262 = vmatprep.subr.msk.bf16.mxu0 %vm917_vm0, %v2399_v54 }
  0xef   :  { %2270 = vmatprep.subr.msk.bf16.mxu1 %vm917_vm0, %v2400_v56 }
  0xf5   :  { %2185 = vmatpush3.bf16.xpose.msra.mxu0 %v1213_v59 }
  0xf6   :  { %2203 = vmatpush3.bf16.xpose.msra.mxu1 %v1261_v61  ;;  %2263 = vmatprep.subr.msk.bf16.mxu0 %vm917_vm0, %v2403_v60 }
  0xf7   :  { %2271 = vmatprep.subr.msk.bf16.mxu1 %vm917_vm0, %v2404_v62 }
  0xfd   :  { %2187 = vmatpush3.bf16.xpose.msra.mxu0 %v1210_v1 }
  0xfe   :  { %2205 = vmatpush3.bf16.xpose.msra.mxu1 %v1258_v2  ;;  %v2465_v2 = vmov -inf  }
  0xff   :  { %18 = vst.msk [vmem:[#allocation2] sm:$0x1] %vm17_vm2, %v2465_v2 }
 0x104   :  { %v3030_v3 = vpop.f32.mrf.mxu0  ;;  %2189 = vmatmul.mubr.msk.bf16.vlgmr.msra.gmra.mxu0 %vm917_vm0, %v2566_v28 }
 0x105   :  { %v3034_v4 = vpop.f32.mrf.mxu1  ;;  %2207 = vmatmul.mubr.msk.bf16.vlgmr.msra.gmra.mxu1 %vm917_vm0, %v2566_v28  ;;  %v1636_v29 = vsel %vm1635_vm1, %v3030_v3, -inf }
 0x106   :  { %v3038_v5 = vpop.f32.mrf.mxu0  ;;  %v1638_v30 = vsel %vm1635_vm1, %v3034_v4, -inf }
 0x107   :  { %v3040_v6 = vpop.f32.mrf.mxu1  ;;  %v1637_v33 = vsel %vm1635_vm1, %v3038_v5, -inf }
 0x108   :  { %v1343_v7 = vpop.f32.mrf.mxu0  ;;  %v1639_v34 = vsel %vm1635_vm1, %v3040_v6, -inf }
 0x109   :  { %v1384_v8 = vpop.f32.mrf.mxu1  ;;  %v2466_v7 = vmov 0  }
 0x10a   :  { %v1344_v9 = vpop.f32.mrf.mxu0  ;;  %2277 = vset.pattern.permute.xlu0 %v2466_v7  ;;  %2278 = vset.pattern.permute.xlu1 %v2466_v7  ;;  %v2467_v8 = vmov 0.0  }
 0x10b   :  { %v1385_v10 = vpop.f32.mrf.mxu1  ;;  %19 = vst.msk [vmem:[#allocation3] sm:$0x1] %vm17_vm2, %v2467_v8  ;;  %v3100_v9 = vld [vmem:[#allocation2] sm:$0x1] }
 0x144   :  { %v3042_v11 = vpop.f32.mrf.mxu0 }
 0x145   :  { %v3044_v12 = vpop.f32.mrf.mxu1  ;;  %v1640_v26 = vsel %vm1635_vm1, %v3042_v11, -inf }
 0x146   :  { %v3046_v13 = vpop.f32.mrf.mxu0  ;;  %v1644_v31 = vsel %vm1635_vm1, %v3044_v12, -inf  ;;  %v1641_v37 = vmax.f32 %v1636_v29, %v1640_v26 }
 0x147   :  { %v3048_v14 = vpop.f32.mrf.mxu1  ;;  %v1642_v27 = vsel %vm1635_vm1, %v3046_v13, -inf  ;;  %v1645_v42 = vmax.f32 %v1638_v30, %v1644_v31 }
 0x148   :  { %v1425_v15 = vpop.f32.mrf.mxu0  ;;  %v1646_v32 = vsel %vm1635_vm1, %v3048_v14, -inf  ;;  %v1643_v38 = vmax.f32 %v1637_v33, %v1642_v27 }
 0x149   :  { %v1466_v16 = vpop.f32.mrf.mxu1  ;;  %v1647_v43 = vmax.f32 %v1639_v34, %v1646_v32 }
 0x14a   :  { %v1426_v17 = vpop.f32.mrf.mxu0 }
 0x14b   :  { %v1467_v28 = vpop.f32.mrf.mxu1  ;;  %v1680_v17 = vlaneseq }
 0x14d   :  { %v3110_v28 = vshrl.u32 %v1680_v17, 7 }
 0x184   :  { %v3050_v18 = vpop.f32.mrf.mxu0 }
 0x185   :  { %v3052_v19 = vpop.f32.mrf.mxu1  ;;  %v1648_v35 = vsel %vm1635_vm1, %v3050_v18, -inf }
 0x186   :  { %v3054_v20 = vpop.f32.mrf.mxu0  ;;  %v1652_v39 = vsel %vm1635_vm1, %v3052_v19, -inf  ;;  %v1649_v46 = vmax.f32 %v1641_v37, %v1648_v35 }
 0x187   :  { %v3056_v21 = vpop.f32.mrf.mxu1  ;;  %v1650_v36 = vsel %vm1635_vm1, %v3054_v20, -inf  ;;  %v1653_v50 = vmax.f32 %v1645_v42, %v1652_v39 }
 0x188   :  { %v1507_v22 = vpop.f32.mrf.mxu0  ;;  %v1654_v40 = vsel %vm1635_vm1, %v3056_v21, -inf  ;;  %v1651_v47 = vmax.f32 %v1643_v38, %v1650_v36 }
 0x189   :  { %v1548_v23 = vpop.f32.mrf.mxu1  ;;  %v1655_v51 = vmax.f32 %v1647_v43, %v1654_v40  ;;  %v1682_v22 = vsub.s32 0, %v3110_v28 }
 0x18a   :  { %v1508_v24 = vpop.f32.mrf.mxu0 }
 0x18b   :  { %v1549_v25 = vpop.f32.mrf.mxu1 }
 0x1c4   :  { %v3082_v41 = vpop.f32.mrf.mxu0 }
 0x1c5   :  { %v1656_v44 = vsel %vm1635_vm1, %v3082_v41, -inf  ;;  %v3086_v45 = vpop.f32.mrf.mxu1 }
 0x1c6   :  { %v1660_v48 = vsel %vm1635_vm1, %v3086_v45, -inf  ;;  %v3090_v49 = vpop.f32.mrf.mxu0  ;;  %v1657_v56 = vmax.f32 %v1649_v46, %v1656_v44 }
 0x1c7   :  { %v1658_v52 = vsel %vm1635_vm1, %v3090_v49, -inf  ;;  %v3094_v53 = vpop.f32.mrf.mxu1  ;;  %v1661_v59 = vmax.f32 %v1653_v50, %v1660_v48 }
 0x1c8   :  { %v1662_v54 = vsel %vm1635_vm1, %v3094_v53, -inf  ;;  %v1589_v55 = vpop.f32.mrf.mxu0  ;;  %v1659_v57 = vmax.f32 %v1651_v47, %v1658_v52 }
 0x1c9   :  { %v1630_v58 = vpop.f32.mrf.mxu1  ;;  %v1663_v60 = vmax.f32 %v1655_v51, %v1662_v54 }
 0x1ca   :  { %v1590_v61 = vpop.f32.mrf.mxu0  ;;  %v1664_v62 = vmax.f32 %v1657_v56, %v1659_v57 }
 0x1cb   :  { %v1631_v63 = vpop.f32.mrf.mxu1  ;;  %v1665_v0 = vmax.f32 %v1661_v59, %v1663_v60 }
 0x1cd   :  { %v1666_v1 = vmax.f32 %v1664_v62, %v1665_v0 }
 0x1cf   :  { %1667 = vmax.xlane.f32.xlu0 %v1666_v1 }
 0x258   :  { %v1668_v10 = vpop.xlane.xlu0 %1667 }
 0x259   :  { %v3103_v15 = vmax.f32 %v3100_v9, %v1668_v10 }
 0x25b   :  { %v1671_v16 = vsub.f32 %v3100_v9, %v3103_v15  ;;  %1768 = vst.msk [vmem:[#allocation2] sm:$0x1] %vm17_vm2, %v3103_v15  ;;  %1677 = vperm.xlu0 %2277, %v3103_v15   ;;  %v1787_v9 = vcombine.low %v3042_v11, %v3046_v13  ;;  %v1788_v15 = vcombine.low %v3044_v12, %v3048_v14 }
 0x2d6   :  { %v1678_v23 = vpop.permute.xlu0 %1677 }
 0x2d7   :  { %v1683_v24 = vrot.slane %v1678_v23, %v1682_v22 }
 0x2d9   :  { %v1684_v25 = vsub.f32 %v3030_v3, %v1683_v24  ;;  %v1685_v26 = vsub.f32 %v3038_v5, %v1683_v24  ;;  %v1686_v27 = vsub.f32 %v3034_v4, %v1683_v24  ;;  %v1687_v29 = vsub.f32 %v3040_v6, %v1683_v24 }
 0x2da   :  { %v1688_v30 = vsub.f32 %v3042_v11, %v1683_v24  ;;  %v1689_v34 = vsub.f32 %v3046_v13, %v1683_v24  ;;  %v1690_v36 = vsub.f32 %v3044_v12, %v1683_v24  ;;  %v1691_v38 = vsub.f32 %v3048_v14, %v1683_v24 }
 0x2db   :  { %v1700_v31 = vmul.f32 1.442695, %v1684_v25  ;;  %v1702_v32 = vmul.f32 1.442695, %v1685_v26  ;;  %v1704_v33 = vmul.f32 1.442695, %v1686_v27  ;;  %v1692_v40 = vsub.f32 %v3050_v18, %v1683_v24 }
 0x2dc   :  { %v1706_v35 = vmul.f32 1.442695, %v1687_v29  ;;  %v1708_v37 = vmul.f32 1.442695, %v1688_v30  ;;  %v1710_v39 = vmul.f32 1.442695, %v1689_v34  ;;  %v1693_v43 = vsub.f32 %v3054_v20, %v1683_v24 }
 0x2dd   :  { %2407 = vpow2.f32 %v1700_v31  ;;  %v1712_v42 = vmul.f32 1.442695, %v1690_v36  ;;  %v1714_v44 = vmul.f32 1.442695, %v1691_v38  ;;  %v1694_v46 = vsub.f32 %v3052_v19, %v1683_v24 }
 0x2de   :  { %2409 = vpow2.f32 %v1702_v32  ;;  %v1716_v47 = vmul.f32 1.442695, %v1692_v40  ;;  %v1695_v48 = vsub.f32 %v3056_v21, %v1683_v24  ;;  %v1718_v50 = vmul.f32 1.442695, %v1693_v43 }
 0x2df   :  { %2411 = vpow2.f32 %v1704_v33  ;;  %v1696_v52 = vsub.f32 %v3082_v41, %v1683_v24  ;;  %v1720_v54 = vmul.f32 1.442695, %v1694_v46  ;;  %v1697_v58 = vsub.f32 %v3090_v49, %v1683_v24 }
 0x2e0   :  { %2413 = vpow2.f32 %v1706_v35  ;;  %v1722_v59 = vmul.f32 1.442695, %v1695_v48  ;;  %v1698_v63 = vsub.f32 %v3086_v45, %v1683_v24  ;;  %v1699_v8 = vsub.f32 %v3094_v53, %v1683_v24 }
 0x2e1   :  { %2415 = vpow2.f32 %v1708_v37  ;;  %v1724_v0 = vmul.f32 1.442695, %v1696_v52  ;;  %v1726_v10 = vmul.f32 1.442695, %v1697_v58  ;;  %v1834_v11 = vcombine.low %v3050_v18, %v3054_v20 }
 0x2e2   :  { %2417 = vpow2.f32 %v1710_v39  ;;  %v1728_v26 = vmul.f32 1.442695, %v1698_v63  ;;  %v1730_v31 = vmul.f32 1.442695, %v1699_v8  ;;  %v1670_v8 = vld [vmem:[#allocation3] sm:$0x1]  ;;  %v1835_v12 = vcombine.low %v3052_v19, %v3056_v21 }
 0x2e3   :  { %2419 = vpow2.f32 %v1712_v42 }
 0x2e4   :  { %2421 = vpow2.f32 %v1714_v44 }
 0x2e5   :  { %2423 = vpow2.f32 %v1716_v47 }
 0x2e6   :  { %2425 = vpow2.f32 %v1718_v50 }
 0x2e7   :  { %2427 = vpow2.f32 %v1720_v54 }
 0x2e8   :  { %2429 = vpow2.f32 %v1722_v59 }
 0x2e9   :  { %2431 = vpow2.f32 %v1724_v0 }
 0x2ea   :  { %v2408_v51 = vpop.eup %2407  ;;  %2433 = vpow2.f32 %v1726_v10 }
 0x2eb   :  { %v2410_v55 = vpop.eup %2409  ;;  %v1732_v56 = vsel %vm1635_vm1, %v2408_v51, 0.0  ;;  %2435 = vpow2.f32 %v1728_v26 }
 0x2ec   :  { %v2412_v57 = vpop.eup %2411  ;;  %v1733_v60 = vsel %vm1635_vm1, %v2410_v55, 0.0  ;;  %2437 = vpow2.f32 %v1730_v31  ;;  %v2468_v31 = vmov 1966171168  }
 0x2ed   :  { %v2414_v61 = vpop.eup %2413  ;;  %v1734_v62 = vadd.f32 %v1733_v60, %v1732_v56  ;;  %v1735_v1 = vsel %vm1635_vm1, %v2412_v57, 0.0 }
 0x2ee   :  { %v2416_v2 = vpop.eup %2415  ;;  %v1737_v17 = vsel %vm1635_vm1, %v2414_v61, 0.0 }
 0x2ef   :  { %v1736_v7 = vadd.f32 %v1735_v1, %v1734_v62  ;;  %v2418_v23 = vpop.eup %2417  ;;  %v1739_v27 = vsel %vm1635_vm1, %v2416_v2, 0.0  ;;  %v1672_v2 = vmul.f32 1.442695, %v1671_v16  ;;  %v1836_v16 = vcombine.low %v3082_v41, %v3090_v49 }
 0x2f0   :  { %v2420_v29 = vpop.eup %2419  ;;  %v1741_v32 = vsel %vm1635_vm1, %v2418_v23, 0.0 }
 0x2f1   :  { %v1738_v25 = vadd.f32 %v1737_v17, %v1736_v7  ;;  %v2422_v33 = vpop.eup %2421  ;;  %v1743_v24 = vsel %vm1635_vm1, %v2420_v29, 0.0  ;;  %2439 = vpow2.f32 %v1672_v2  ;;  %v1893_v29 = vld [vmem:[#allocation2] sm:$0x1] }
 0x2f2   :  { %v2424_v35 = vpop.eup %2423  ;;  %v1745_v37 = vsel %vm1635_vm1, %v2422_v33, 0.0 }
 0x2f3   :  { %v1740_v30 = vadd.f32 %v1739_v27, %v1738_v25  ;;  %v2426_v38 = vpop.eup %2425  ;;  %v1747_v40 = vsel %vm1635_vm1, %v2424_v35, 0.0  ;;  %v1785_v35 = vcombine.low %v3030_v3, %v3038_v5 }
 0x2f4   :  { %v2428_v42 = vpop.eup %2427  ;;  %v1749_v44 = vsel %vm1635_vm1, %v2426_v38, 0.0 }
 0x2f5   :  { %v1742_v34 = vadd.f32 %v1741_v32, %v1740_v30  ;;  %v2430_v46 = vpop.eup %2429  ;;  %v1751_v48 = vsel %vm1635_vm1, %v2428_v42, 0.0  ;;  %v1790_v32 = vunpack.c.l.s4 %v2468_v31 }
 0x2f6   :  { %v2432_v50 = vpop.eup %2431  ;;  %v1753_v52 = vsel %vm1635_vm1, %v2430_v46, 0.0 }
 0x2f7   :  { %v1744_v36 = vadd.f32 %v1743_v24, %v1742_v34  ;;  %v2434_v54 = vpop.eup %2433  ;;  %v1755_v56 = vsel %vm1635_vm1, %v2432_v50, 0.0  ;;  %v1791_v33 = vunpack.c.0.s8 %v1790_v32  ;;  %v1837_v34 = vcombine.low %v3086_v45, %v3094_v53 }
 0x2f8   :  { %v2436_v57 = vpop.eup %2435  ;;  %v1757_v59 = vsel %vm1635_vm1, %v2434_v54, 0.0 }
 0x2f9   :  { %v1746_v39 = vadd.f32 %v1745_v37, %v1744_v36  ;;  %v2438_v60 = vpop.eup %2437  ;;  %v1759_v62 = vsel %vm1635_vm1, %v2436_v57, 0.0  ;;  %v1794_v24 = vsub.s32 %v1791_v33, %v3110_v28  ;;  %v1786_v36 = vcombine.low %v3034_v4, %v3040_v6 }
 0x2fa   :  { %v1761_v0 = vsel %vm1635_vm1, %v2438_v60, 0.0 }
 0x2fb   :  { %v1748_v43 = vadd.f32 %v1747_v40, %v1746_v39  ;;  %v1809_v13 = vrot.slane %v1787_v9, %v1794_v24  ;;  %v1816_v14 = vrot.slane %v1788_v15, %v1794_v24  ;;  %v1858_v41 = vrot.slane %v1836_v16, %v1794_v24 }
 0x2fc   :  { %v1865_v49 = vrot.slane %v1837_v34, %v1794_v24  ;;  %v1795_v37 = vrot.slane %v1785_v35, %v1794_v24  ;;  %v1802_v45 = vrot.slane %v1786_v36, %v1794_v24  ;;  %v1844_v53 = vrot.slane %v1834_v11, %v1794_v24 }
 0x2fd   :  { %v1750_v47 = vadd.f32 %v1749_v44, %v1748_v43  ;;  %v1851_v38 = vrot.slane %v1835_v12, %v1794_v24  ;;  %v1818_v39 = vcombine.low %v1809_v13, %v1816_v14 }
 0x2fe   :  { %v2440_v7 = vpop.eup %2439  ;;  %v1867_v40 = vcombine.low %v1858_v41, %v1865_v49  ;;  %v1817_v3 = vcombine.low %v1795_v37, %v1802_v45 }
 0x2ff   :  { %v1752_v51 = vadd.f32 %v1751_v48, %v1750_v47  ;;  %v1674_v10 = vmul.f32 %v2440_v7, %v1670_v8  ;;  %v1866_v5 = vcombine.low %v1844_v53, %v1851_v38  ;;  %v1832_v42 = vrot.slane %v1818_v39, %v1794_v24 }
 0x300   :  { %v1881_v4 = vrot.slane %v1867_v40, %v1794_v24  ;;  %v1825_v6 = vrot.slane %v1817_v3, %v1794_v24 }
 0x301   :  { %v1754_v55 = vadd.f32 %v1753_v52, %v1752_v51  ;;  %v1874_v43 = vrot.slane %v1866_v5, %v1794_v24 }
 0x302   :  { %v1833_v19 = vcombine.low %v1825_v6, %v1832_v42 }
 0x303   :  { %v1756_v58 = vadd.f32 %v1755_v56, %v1754_v55  ;;  %v1882_v20 = vcombine.low %v1874_v43, %v1881_v4 }
 0x305   :  { %v1758_v61 = vadd.f32 %v1757_v59, %v1756_v58 }
 0x307   :  { %v1760_v63 = vadd.f32 %v1759_v62, %v1758_v61 }
 0x309   :  { %v1762_v1 = vadd.f32 %v1761_v0, %v1760_v63 }
 0x30b   :  { %1763 = vadd.xlane.f32.xlu1 %v1762_v1 }
 0x394   :  { %v1764_v17 = vpop.xlane.xlu1 %1763 }
 0x395   :  { %v1765_v23 = vadd.f32 %v1764_v17, %v1674_v10 }
 0x397   :  { %1767 = vst.msk [vmem:[#allocation3] sm:$0x1] %vm17_vm2, %v1765_v23 }
 0x39e   :  { %v1894_v25 = vld [vmem:[#allocation3] sm:$0x1] }
 0x39f   :  { %2441 = vlog2.f32 %v1894_v25 }
 0x3ac   :  { %v2442_v26 = vpop.eup %2441 }
 0x3ad   :  { %v1896_v27 = vmul.f32 0.6931472, %v2442_v26 }
 0x3af   :  { %v1897_v30 = vadd.f32 %v1896_v27, %v1893_v29 }
 0x3b1   :  { %1902 = vperm.xlu1 %2278, %v1897_v30  }
 0x42c   :  { %v1903_v18 = vpop.permute.xlu1 %1902 }
 0x42d   :  { %v1908_v21 = vrot.slane %v1903_v18, %v1682_v22 }
 0x42f   :  { %v1909_v44 = vsub.f32 %v1833_v19, %v1908_v21  ;;  %v1910_v46 = vsub.f32 %v1882_v20, %v1908_v21 }
 0x431   :  { %1911 = vst [vmem:[#allocation4] sm:$0xff] %v1909_v44  ;;  %1912 = vst [vmem:[#allocation4 + $0x8] sm:$0xff] %v1910_v46 }
 0x432   :  { %2454 = shalt.err (!%p2451_p4)
}
 0x433   :  { %1922 = dma.vmem_to_hbm [thread:$0]  %s1920_s7, 256, %s3175_s2, [#allocation5]  }
 0x434   :  { %2463 = dma.done.wait [#allocation5], 256  }
 0x435   :  { %2464 = vsyncadd [#allocation5], 4294967040 }
 0x436   :  { %1926 = vsyncpa [#allocation5], 1 }

</bundles_post_ra>
